<compile_context>
chip_gen: v5e
topology: v5e:2x2
jax: 0.10.0
libtpu: 0.0.40
codegen_flags: <defaults>
</compile_context>

<pallas_src>
import functools

import jax
import jax.numpy as jnp
from jax.experimental import pallas as pl
from jax.experimental.pallas import tpu as pltpu


# ----------------------------------------------------------------------------
# Fused Pallas kernel (Bt images per grid step)
# ----------------------------------------------------------------------------
def _basic_block_kernel(x_ref, w1_ref, b1_ref, w2_ref, b2_ref, o_ref,
                        pad_ref, *, H):
    """conv1+bn1+relu + conv2+bn2+residual+relu, fully fused, lane-dense.

    x_ref:   (M, WC)         lane-dense input slab, M = Bt*H (also the residual)
    w1_ref:  (3*WC, WC)      block-Toeplitz conv1 weights (BN1 scale folded in)
    b1_ref:  (1, WC)         tiled BN1 bias
    w2_ref:  (3*WC, WC)      block-Toeplitz conv2 weights (BN2 scale folded in)
    b2_ref:  (1, WC)         tiled BN2 bias
    o_ref:   (M, WC)         lane-dense output slab
    pad_ref: (M+2, WC) f32   shared row-halo scratch (guard rows 0 and M+1)
    """
    M, WC = x_ref.shape

    # Zero ONLY the two guard rows.  Interior rows 1..M are fully overwritten
    # below, so no whole-buffer zero fill is needed.  (Done every step, not
    # under pl.when(pid==0): scratch is per-TensorCore when the grid is
    # sharded across cores, so step 0 may not run on every core.)
    pad_ref[pl.ds(0, 1), :] = jnp.zeros((1, WC), jnp.float32)
    pad_ref[pl.ds(M + 1, 1), :] = jnp.zeros((1, WC), jnp.float32)

    # Per-image row-boundary masks: inside the flat (Bt*H) slab, the shifted
    # taps at an image's first/last row would otherwise read the neighbouring
    # image's rows.
    r = jax.lax.broadcasted_iota(jnp.int32, (M, 1), 0)
    not_first = (r % H) != 0            # keep the "row above" tap
    not_last = (r % H) != (H - 1)       # keep the "row below" tap

    def conv(a, w_ref, b_ref):
        # a: (M, WC) activation.  Row halos via the shared padded scratch:
        # pad rows 1..M hold `a`; guard rows 0 and M+1 stay zero.
        pad_ref[pl.ds(1, M), :] = a
        up = jnp.where(not_first, pad_ref[pl.ds(0, M), :], 0.0)     # a[r-1]
        down = jnp.where(not_last, pad_ref[pl.ds(2, M), :], 0.0)    # a[r+1]
        # Single K = 3*WC matmul: lane-dim concat is 128-aligned (WC = W*C).
        lhs = jnp.concatenate([up, a, down], axis=1)                 # (M, 3*WC)
        return jnp.dot(lhs, w_ref[...],
                       preferred_element_type=jnp.float32) + b_ref[...]

    x2d = x_ref[...].astype(jnp.float32)

    # ---- conv1 + bn1 + relu (intermediate never leaves VMEM) ----
    h1 = jnp.maximum(conv(x2d, w1_ref, b1_ref), 0.0)

    # ---- conv2 + bn2 + residual add + relu ----
    out = jnp.maximum(conv(h1, w2_ref, b2_ref) + x2d, 0.0)
    o_ref[...] = out.astype(o_ref.dtype)


# ----------------------------------------------------------------------------
# One-time parameter preparation (BN fold + fused block-Toeplitz weights)
# ----------------------------------------------------------------------------
def _toeplitz_weights(w_hwio, W):
    """(3,3,Cin,Cout) HWIO -> (3*W*Cin, W*Cout).

    Folds the dx taps and the width zero-padding into a banded block-Toeplitz
    matrix, then stacks the 3 dy taps along K so that
      out_row(h) = concat(x_pad_row(h-1), x_pad_row(h), x_pad_row(h+1)) @ W.
    TODO(synk): at small C most lanes of each Toeplitz row are structural
    zeros (~3*C/(W*C) dense); switch to a channels-on-lanes formulation if
    this layer ever becomes MXU-bound.
    """
    _, _, Cin, Cout = w_hwio.shape
    wi = jnp.arange(W)[:, None]                 # input column index
    wo = jnp.arange(W)[None, :]                 # output column index
    dx = wi - wo + 1                            # tap index; valid taps 0..2
    valid = (dx >= 0) & (dx <= 2)
    blocks = w_hwio[:, jnp.clip(dx, 0, 2), :, :]          # (3, W, W, Cin, Cout)
    blocks = jnp.where(valid[None, :, :, None, None], blocks, 0.0)
    # element [dy, wi*Cin+ci, wo*Cout+co] = wt[dy, wi-wo+1, ci, co] (or 0)
    toe = blocks.transpose(0, 1, 3, 2, 4).reshape(3, W * Cin, W * Cout)
    return toe.reshape(3 * W * Cin, W * Cout)   # dy taps stacked along K


def prepare_params(params, W, eps=1e-5):
    """Hoisted, one-time prep: fold eval-mode BN and build lane-dense weights."""
    s1 = params["bn1_gamma"] / jnp.sqrt(params["bn1_var"] + eps)
    b1 = params["bn1_beta"] - params["bn1_mean"] * s1
    s2 = params["bn2_gamma"] / jnp.sqrt(params["bn2_var"] + eps)
    b2 = params["bn2_beta"] - params["bn2_mean"] * s2
    # PyTorch OIHW -> HWIO, fold BN scale into the output channels.
    w1 = jnp.transpose(params["conv1_w"], (2, 3, 1, 0)) * s1[None, None, None, :]
    w2 = jnp.transpose(params["conv2_w"], (2, 3, 1, 0)) * s2[None, None, None, :]
    return {
        "w1": _toeplitz_weights(w1, W).astype(jnp.float32),
        "w2": _toeplitz_weights(w2, W).astype(jnp.float32),
        "b1": jnp.tile(b1, W).reshape(1, -1).astype(jnp.float32),
        "b2": jnp.tile(b2, W).reshape(1, -1).astype(jnp.float32),
    }


# ----------------------------------------------------------------------------
# Forward wrappers
# ----------------------------------------------------------------------------
def _pick_batch_tile(N, H, max_rows=512):
    """Largest Bt dividing N with Bt*H <= max_rows, keeping >= 2 grid steps
    when possible (so ("parallel",) can shard across v7x's two TensorCores)."""
    candidates = [bt for bt in range(1, N + 1)
                  if N % bt == 0 and bt * H <= max_rows]
    if not candidates:
        return 1
    multi = [bt for bt in candidates if N // bt >= 2]
    return max(multi) if multi else max(candidates)


def basic_block_forward_lane_dense(x_lane, prepped, *, batch_tile=None):
    """BasicBlock forward on lane-dense activations.

    x_lane: (N, H, W*C) — keep this layout across consecutive BasicBlocks so
    no NCHW<->NHWC transposes are paid between blocks.  Returns (N, H, W*C).
    """
    N, H, WC = x_lane.shape
    Bt = batch_tile if batch_tile is not None else _pick_batch_tile(N, H)
    assert N % Bt == 0
    M = Bt * H                                   # matmul M per grid step
    assert M % 8 == 0 and WC % 128 == 0, "lane-dense tiling expects (8,128) alignment"

    x2d = x_lane.reshape(N * H, WC)              # free (contiguous) reshape
    kernel = functools.partial(_basic_block_kernel, H=H)

    out = pl.pallas_call(
        kernel,
        out_shape=jax.ShapeDtypeStruct((N * H, WC), x_lane.dtype),
        grid_spec=pltpu.PrefetchScalarGridSpec(
            num_scalar_prefetch=0,
            grid=(N // Bt,),
            in_specs=[
                pl.BlockSpec((M, WC), lambda n: (n, 0)),
                pl.BlockSpec(prepped["w1"].shape, lambda n: (0, 0)),
                pl.BlockSpec((1, WC), lambda n: (0, 0)),
                pl.BlockSpec(prepped["w2"].shape, lambda n: (0, 0)),
                pl.BlockSpec((1, WC), lambda n: (0, 0)),
            ],
            out_specs=pl.BlockSpec((M, WC), lambda n: (n, 0)),
            scratch_shapes=[pltpu.VMEM((M + 2, WC), jnp.float32)],
        ),
        compiler_params=pltpu.CompilerParams(
            dimension_semantics=("parallel",)),
    )(x2d, prepped["w1"], prepped["b1"], prepped["w2"], prepped["b2"])

    return out.reshape(N, H, WC)


def basic_block_forward(x_nchw, prepped, *, batch_tile=None):
    """NCHW (PyTorch-layout) adapter — only for the standalone test.

    In a full network the NCHW<->lane-dense conversion is done once at the
    network boundary and `basic_block_forward_lane_dense` is chained directly.
    """
    N, C, H, W = x_nchw.shape
    x_lane = jnp.transpose(x_nchw, (0, 2, 3, 1)).reshape(N, H, W * C)
    out = basic_block_forward_lane_dense(x_lane, prepped, batch_tile=batch_tile)
    return jnp.transpose(out.reshape(N, H, W, C), (0, 3, 1, 2))   # -> NCHW


# ----------------------------------------------------------------------------
# Pure-JAX reference (for correctness check)
# ----------------------------------------------------------------------------
def basic_block_reference(x_nchw, params):
    eps = 1e-5
    dn = ("NCHW", "OIHW", "NCHW")

    def conv(x, w):
        return jax.lax.conv_general_dilated(x, w, (1, 1), ((1, 1), (1, 1)),
                                            dimension_numbers=dn)

    def bn(x, g, b, m, v):
        g = g.reshape(1, -1, 1, 1)
        b = b.reshape(1, -1, 1, 1)
        m = m.reshape(1, -1, 1, 1)
        v = v.reshape(1, -1, 1, 1)
        return (x - m) / jnp.sqrt(v + eps) * g + b

    out = conv(x_nchw, params["conv1_w"])
    out = bn(out, params["bn1_gamma"], params["bn1_beta"],
             params["bn1_mean"], params["bn1_var"])
    out = jnp.maximum(out, 0.0)
    out = conv(out, params["conv2_w"])
    out = bn(out, params["bn2_gamma"], params["bn2_beta"],
             params["bn2_mean"], params["bn2_var"])
    out = out + x_nchw
    return jnp.maximum(out, 0.0)


# ----------------------------------------------------------------------------
# Deterministic parameter init + main
# ----------------------------------------------------------------------------
def init_params(key, inplanes, planes):
    k1, k2, k3, k4 = jax.random.split(key, 4)
    fan1 = inplanes * 3 * 3
    fan2 = planes * 3 * 3
    return {
        # PyTorch Conv2d weight layout: (out, in, kh, kw)
        "conv1_w": jax.random.normal(k1, (planes, inplanes, 3, 3),
                                     jnp.float32) * (2.0 / fan1) ** 0.5,
        "conv2_w": jax.random.normal(k2, (planes, planes, 3, 3),
                                     jnp.float32) * (2.0 / fan2) ** 0.5,
        # BatchNorm2d(planes) eval-mode params/stats; gamma perturbed slightly
        # so the BN math is exercised.
        "bn1_gamma": jnp.ones((planes,), jnp.float32)
                     + 0.1 * jax.random.normal(k3, (planes,), jnp.float32),
        "bn1_beta": jnp.zeros((planes,), jnp.float32),
        "bn1_mean": jnp.zeros((planes,), jnp.float32),
        "bn1_var": jnp.ones((planes,), jnp.float32),
        "bn2_gamma": jnp.ones((planes,), jnp.float32)
                     + 0.1 * jax.random.normal(k4, (planes,), jnp.float32),
        "bn2_beta": jnp.zeros((planes,), jnp.float32),
        "bn2_mean": jnp.zeros((planes,), jnp.float32),
        "bn2_var": jnp.ones((planes,), jnp.float32),
    }


if __name__ == "__main__":
    key = jax.random.PRNGKey(0)
    kx, kp = jax.random.split(key)

    # inplanes = planes = 8, stride = 1; W*C = 128 (lane-dense).
    # N=16 with H=16 gives a batch tile of 8 -> M=128 rows per matmul and a
    # grid of 2 steps (one per TensorCore on v7x).
    N, C, H, W = 16, 8, 16, 16
    x = jax.random.normal(kx, (N, C, H, W), jnp.float32)
    params = init_params(kp, inplanes=C, planes=C)

    prepped = prepare_params(params, W=W)      # one-time parameter preparation
    fwd = jax.jit(basic_block_forward)
    out = jax.block_until_ready(fwd(x, prepped))

    ref = basic_block_reference(x, params)
    assert out.shape == ref.shape == (N, C, H, W)
    assert jnp.allclose(out, ref, atol=2e-4, rtol=2e-4), "mismatch vs reference"

    print("KERNEL_OK")
</pallas_src>

<mosaic_0001>
module attributes {stable_mosaic.version = 11 : i64} {
  func.func @_basic_block_kernel(%arg0: i32, %arg1: memref<128x128xf32, #tpu.memory_space<vmem>>, %arg2: memref<384x128xf32, #tpu.memory_space<vmem>>, %arg3: memref<1x128xf32, #tpu.memory_space<vmem>>, %arg4: memref<384x128xf32, #tpu.memory_space<vmem>>, %arg5: memref<1x128xf32, #tpu.memory_space<vmem>>, %arg6: memref<128x128xf32, #tpu.memory_space<vmem>>, %arg7: memref<130x128xf32, #tpu.memory_space<vmem>>) attributes {dimension_semantics = [#tpu.dimension_semantics<parallel>], iteration_bounds = array<i64: 2>, scalar_prefetch = 0 : i64, scratch_operands = 1 : i64, tpu.core_type = #tpu.core_type<tc>, window_params = [{transform_indices = @transform_0, window_bounds = array<i64: 128, 128>}, {pipeline_mode = #tpu.pipeline_mode<synchronous>, transform_indices = @transform_1, window_bounds = array<i64: 384, 128>}, {pipeline_mode = #tpu.pipeline_mode<synchronous>, transform_indices = @transform_2, window_bounds = array<i64: 1, 128>}, {pipeline_mode = #tpu.pipeline_mode<synchronous>, transform_indices = @transform_3, window_bounds = array<i64: 384, 128>}, {pipeline_mode = #tpu.pipeline_mode<synchronous>, transform_indices = @transform_4, window_bounds = array<i64: 1, 128>}, {transform_indices = @transform_5, window_bounds = array<i64: 128, 128>}]} {
    %cst = arith.constant 0.000000e+00 : f32
    %0 = vector.broadcast %cst : f32 to vector<1x128xf32>
    %c0 = arith.constant 0 : index
    %c0_0 = arith.constant 0 : index
    %1 = vector.load %arg7[%c0, %c0_0] : memref<130x128xf32, #tpu.memory_space<vmem>>, vector<1x128xf32>
    tpu.vector_store %arg7[%c0, %c0_0], %0 {strides = array<i32>} : memref<130x128xf32, #tpu.memory_space<vmem>>, vector<1x128xf32>,
    %cst_1 = arith.constant 0.000000e+00 : f32
    %2 = vector.broadcast %cst_1 : f32 to vector<1x128xf32>
    %c129 = arith.constant 129 : index
    %c0_2 = arith.constant 0 : index
    %3 = vector.load %arg7[%c129, %c0_2] : memref<130x128xf32, #tpu.memory_space<vmem>>, vector<1x128xf32>
    tpu.vector_store %arg7[%c129, %c0_2], %2 {strides = array<i32>} : memref<130x128xf32, #tpu.memory_space<vmem>>, vector<1x128xf32>,
    %4 = tpu.iota {dimensions = array<i32: 0>} : vector<128x1xi32>
    %c16_i32 = arith.constant 16 : i32
    %c0_i32 = arith.constant 0 : i32
    %5 = arith.cmpi eq, %c16_i32, %c0_i32 : i32
    %c1_i32 = arith.constant 1 : i32
    %6 = arith.select %5, %c1_i32, %c16_i32 : i32
    %7 = vector.broadcast %6 : i32 to vector<128x1xi32>
    %8 = arith.remsi %4, %7 : vector<128x1xi32>
    %c0_i32_3 = arith.constant 0 : i32
    %9 = vector.broadcast %c0_i32_3 : i32 to vector<128x1xi32>
    %10 = arith.cmpi ne, %8, %9 : vector<128x1xi32>
    %c0_i32_4 = arith.constant 0 : i32
    %11 = vector.broadcast %c0_i32_4 : i32 to vector<128x1xi32>
    %12 = arith.cmpi slt, %8, %11 : vector<128x1xi32>
    %c0_i32_5 = arith.constant 0 : i32
    %13 = arith.cmpi slt, %6, %c0_i32_5 : i32
    %14 = vector.broadcast %13 : i1 to vector<128x1xi1>
    %15 = vector.broadcast %14 : vector<128x1xi1> to vector<128x1xi1>
    %16 = arith.xori %12, %15 : vector<128x1xi1>
    %17 = arith.andi %16, %10 : vector<128x1xi1>
    %18 = vector.broadcast %6 : i32 to vector<128x1xi32>
    %19 = arith.addi %8, %18 : vector<128x1xi32>
    %20 = arith.select %17, %19, %8 : vector<128x1xi1>, vector<128x1xi32>
    %c0_i32_6 = arith.constant 0 : i32
    %21 = vector.broadcast %c0_i32_6 : i32 to vector<128x1xi32>
    %22 = arith.cmpi ne, %20, %21 : vector<128x1xi32>
    %c16_i32_7 = arith.constant 16 : i32
    %c0_i32_8 = arith.constant 0 : i32
    %23 = arith.cmpi eq, %c16_i32_7, %c0_i32_8 : i32
    %c1_i32_9 = arith.constant 1 : i32
    %24 = arith.select %23, %c1_i32_9, %c16_i32_7 : i32
    %25 = vector.broadcast %24 : i32 to vector<128x1xi32>
    %26 = arith.remsi %4, %25 : vector<128x1xi32>
    %c0_i32_10 = arith.constant 0 : i32
    %27 = vector.broadcast %c0_i32_10 : i32 to vector<128x1xi32>
    %28 = arith.cmpi ne, %26, %27 : vector<128x1xi32>
    %c0_i32_11 = arith.constant 0 : i32
    %29 = vector.broadcast %c0_i32_11 : i32 to vector<128x1xi32>
    %30 = arith.cmpi slt, %26, %29 : vector<128x1xi32>
    %c0_i32_12 = arith.constant 0 : i32
    %31 = arith.cmpi slt, %24, %c0_i32_12 : i32
    %32 = vector.broadcast %31 : i1 to vector<128x1xi1>
    %33 = vector.broadcast %32 : vector<128x1xi1> to vector<128x1xi1>
    %34 = arith.xori %30, %33 : vector<128x1xi1>
    %35 = arith.andi %34, %28 : vector<128x1xi1>
    %36 = vector.broadcast %24 : i32 to vector<128x1xi32>
    %37 = arith.addi %26, %36 : vector<128x1xi32>
    %38 = arith.select %35, %37, %26 : vector<128x1xi1>, vector<128x1xi32>
    %c15_i32 = arith.constant 15 : i32
    %39 = vector.broadcast %c15_i32 : i32 to vector<128x1xi32>
    %40 = arith.cmpi ne, %38, %39 : vector<128x1xi32>
    %c0_13 = arith.constant 0 : index
    %c0_14 = arith.constant 0 : index
    %41 = vector.load %arg1[%c0_13, %c0_14] : memref<128x128xf32, #tpu.memory_space<vmem>>, vector<128x128xf32>
    %c1 = arith.constant 1 : index
    %c0_15 = arith.constant 0 : index
    %42 = vector.load %arg7[%c1, %c0_15] : memref<130x128xf32, #tpu.memory_space<vmem>>, vector<128x128xf32>
    tpu.vector_store %arg7[%c1, %c0_15], %41 {strides = array<i32>} : memref<130x128xf32, #tpu.memory_space<vmem>>, vector<128x128xf32>,
    %c0_16 = arith.constant 0 : index
    %c0_17 = arith.constant 0 : index
    %43 = vector.load %arg7[%c0_16, %c0_17] : memref<130x128xf32, #tpu.memory_space<vmem>>, vector<128x128xf32>
    %cst_18 = arith.constant 0.000000e+00 : f32
    %44 = vector.shape_cast %22 : vector<128x1xi1> to vector<128x1xi1>
    %45 = vector.broadcast %44 : vector<128x1xi1> to vector<128x128xi1>
    %46 = vector.broadcast %cst_18 : f32 to vector<128x128xf32>
    %47 = arith.select %45, %43, %46 : vector<128x128xi1>, vector<128x128xf32>
    %c2 = arith.constant 2 : index
    %c0_19 = arith.constant 0 : index
    %48 = vector.load %arg7[%c2, %c0_19] : memref<130x128xf32, #tpu.memory_space<vmem>>, vector<128x128xf32>
    %cst_20 = arith.constant 0.000000e+00 : f32
    %49 = vector.shape_cast %40 : vector<128x1xi1> to vector<128x1xi1>
    %50 = vector.broadcast %49 : vector<128x1xi1> to vector<128x128xi1>
    %51 = vector.broadcast %cst_20 : f32 to vector<128x128xf32>
    %52 = arith.select %50, %48, %51 : vector<128x128xi1>, vector<128x128xf32>
    %53 = tpu.concatenate %47, %41, %52 in 1 : vector<128x128xf32>, vector<128x128xf32>, vector<128x128xf32> -> vector<128x384xf32>
    %c0_21 = arith.constant 0 : index
    %c0_22 = arith.constant 0 : index
    %54 = vector.load %arg2[%c0_21, %c0_22] : memref<384x128xf32, #tpu.memory_space<vmem>>, vector<384x128xf32>
    %cst_23 = arith.constant dense<0.000000e+00> : vector<128x128xf32>
    %55 = tpu.matmul %53, %54, %cst_23 {dimension_numbers = #tpu.dot_dimension_numbers<[1], [0], [0], [1], [0, 0, 1, 1], [], []>} : vector<128x384xf32>, vector<384x128xf32>, vector<128x128xf32> -> vector<128x128xf32>
    %c0_24 = arith.constant 0 : index
    %c0_25 = arith.constant 0 : index
    %56 = vector.load %arg3[%c0_24, %c0_25] : memref<1x128xf32, #tpu.memory_space<vmem>>, vector<1x128xf32>
    %57 = vector.broadcast %56 : vector<1x128xf32> to vector<128x128xf32>
    %58 = arith.addf %55, %57 : vector<128x128xf32>
    %cst_26 = arith.constant 0.000000e+00 : f32
    %59 = vector.broadcast %cst_26 : f32 to vector<128x128xf32>
    %60 = arith.maximumf %58, %59 : vector<128x128xf32>
    %c1_27 = arith.constant 1 : index
    %c0_28 = arith.constant 0 : index
    %61 = vector.load %arg7[%c1_27, %c0_28] : memref<130x128xf32, #tpu.memory_space<vmem>>, vector<128x128xf32>
    tpu.vector_store %arg7[%c1_27, %c0_28], %60 {strides = array<i32>} : memref<130x128xf32, #tpu.memory_space<vmem>>, vector<128x128xf32>,
    %c0_29 = arith.constant 0 : index
    %c0_30 = arith.constant 0 : index
    %62 = vector.load %arg7[%c0_29, %c0_30] : memref<130x128xf32, #tpu.memory_space<vmem>>, vector<128x128xf32>
    %cst_31 = arith.constant 0.000000e+00 : f32
    %63 = vector.shape_cast %22 : vector<128x1xi1> to vector<128x1xi1>
    %64 = vector.broadcast %63 : vector<128x1xi1> to vector<128x128xi1>
    %65 = vector.broadcast %cst_31 : f32 to vector<128x128xf32>
    %66 = arith.select %64, %62, %65 : vector<128x128xi1>, vector<128x128xf32>
    %c2_32 = arith.constant 2 : index
    %c0_33 = arith.constant 0 : index
    %67 = vector.load %arg7[%c2_32, %c0_33] : memref<130x128xf32, #tpu.memory_space<vmem>>, vector<128x128xf32>
    %cst_34 = arith.constant 0.000000e+00 : f32
    %68 = vector.shape_cast %40 : vector<128x1xi1> to vector<128x1xi1>
    %69 = vector.broadcast %68 : vector<128x1xi1> to vector<128x128xi1>
    %70 = vector.broadcast %cst_34 : f32 to vector<128x128xf32>
    %71 = arith.select %69, %67, %70 : vector<128x128xi1>, vector<128x128xf32>
    %72 = tpu.concatenate %66, %60, %71 in 1 : vector<128x128xf32>, vector<128x128xf32>, vector<128x128xf32> -> vector<128x384xf32>
    %c0_35 = arith.constant 0 : index
    %c0_36 = arith.constant 0 : index
    %73 = vector.load %arg4[%c0_35, %c0_36] : memref<384x128xf32, #tpu.memory_space<vmem>>, vector<384x128xf32>
    %cst_37 = arith.constant dense<0.000000e+00> : vector<128x128xf32>
    %74 = tpu.matmul %72, %73, %cst_37 {dimension_numbers = #tpu.dot_dimension_numbers<[1], [0], [0], [1], [0, 0, 1, 1], [], []>} : vector<128x384xf32>, vector<384x128xf32>, vector<128x128xf32> -> vector<128x128xf32>
    %c0_38 = arith.constant 0 : index
    %c0_39 = arith.constant 0 : index
    %75 = vector.load %arg5[%c0_38, %c0_39] : memref<1x128xf32, #tpu.memory_space<vmem>>, vector<1x128xf32>
    %76 = vector.broadcast %75 : vector<1x128xf32> to vector<128x128xf32>
    %77 = arith.addf %74, %76 : vector<128x128xf32>
    %78 = arith.addf %77, %41 : vector<128x128xf32>
    %cst_40 = arith.constant 0.000000e+00 : f32
    %79 = vector.broadcast %cst_40 : f32 to vector<128x128xf32>
    %80 = arith.maximumf %78, %79 : vector<128x128xf32>
    %c0_41 = arith.constant 0 : index
    %c0_42 = arith.constant 0 : index
    %81 = vector.load %arg6[%c0_41, %c0_42] : memref<128x128xf32, #tpu.memory_space<vmem>>, vector<128x128xf32>
    tpu.vector_store %arg6[%c0_41, %c0_42], %80 {strides = array<i32>} : memref<128x128xf32, #tpu.memory_space<vmem>>, vector<128x128xf32>,
    return
  }
  func.func @transform_0(%arg0: i32) -> (i32, i32) {
    %c0_i32 = arith.constant 0 : i32
    %c0_i32_0 = arith.constant 0 : i32
    return %arg0, %c0_i32 : i32, i32
  }
  func.func @transform_1(%arg0: i32) -> (i32, i32) {
    %c0_i32 = arith.constant 0 : i32
    %c0_i32_0 = arith.constant 0 : i32
    %c0_i32_1 = arith.constant 0 : i32
    return %c0_i32, %c0_i32_0 : i32, i32
  }
  func.func @transform_2(%arg0: i32) -> (i32, i32) {
    %c0_i32 = arith.constant 0 : i32
    %c0_i32_0 = arith.constant 0 : i32
    %c0_i32_1 = arith.constant 0 : i32
    return %c0_i32, %c0_i32_0 : i32, i32
  }
  func.func @transform_3(%arg0: i32) -> (i32, i32) {
    %c0_i32 = arith.constant 0 : i32
    %c0_i32_0 = arith.constant 0 : i32
    %c0_i32_1 = arith.constant 0 : i32
    return %c0_i32, %c0_i32_0 : i32, i32
  }
  func.func @transform_4(%arg0: i32) -> (i32, i32) {
    %c0_i32 = arith.constant 0 : i32
    %c0_i32_0 = arith.constant 0 : i32
    %c0_i32_1 = arith.constant 0 : i32
    return %c0_i32, %c0_i32_0 : i32, i32
  }
  func.func @transform_5(%arg0: i32) -> (i32, i32) {
    %c0_i32 = arith.constant 0 : i32
    %c0_i32_0 = arith.constant 0 : i32
    return %arg0, %c0_i32 : i32, i32
  }
}

</mosaic_0001>

<bundles_post_ra>
// kernel: basic_block_forward.1
= control target key start
LH: loop header
LB: loop body
LE: loop exit
PB: predicated region body
PF: predicated region fallthrough
CT: control target
= control target key end

     0   :  { %s1450_s18 = smov 0   ;;  %s2090_s0 = inlined_call_operand.vmem [shape: f32[256,128], index: 0, kind: input, shape index: {}]   ;;  %s2091_s1 = inlined_call_operand.vmem [shape: f32[384,128], index: 1, kind: input, shape index: {}]   ;;  %s2092_s2 = inlined_call_operand.vmem [shape: f32[1,128], index: 2, kind: input, shape index: {}]   ;;  %s2093_s3 = inlined_call_operand.vmem [shape: f32[384,128], index: 3, kind: input, shape index: {}]   ;;  %s2094_s4 = inlined_call_operand.vmem [shape: f32[1,128], index: 4, kind: input, shape index: {}]   ;;  %s2095_s5 = inlined_call_operand.vmem [shape: f32[256,128], index: 5, kind: output, shape index: {}]  }
   0x1 LB: > { %s1325_s19 = sadd.s32 4294967295, %s1417_s18   ;;  %p1329_p0 = scmp.ge.s32.totalorder %s1417_s18, 1  ;;  %s1417_s18 = sphi %s1450_s18, %s15_s18  }
   0x2   : > { %p188_p1 = scmp.lt.s32.totalorder %s1417_s18, 3 }
   0x4   : > { %p189_p2 = pnand %p1329_p0, %p188_p1 }
   0x5   : > { %s1330_s26 = sshll.u32 (!%p189_p2), %s1325_s19, 4 }
   0x6   : > { %192 = sbr.rel (%p189_p2) target bundleno = 514 (0x202), region = 40  ;;  %p217_p3 = scmp.lt.s32.totalorder (!%p189_p2), %s1330_s26, 31 }
   0xb   : > { %v646_v0 = vld [vmem:[%s2091_s1 + $0x78] sm:$0xff]  ;;  %v645_v1 = vld [vmem:[%s2091_s1 + $0x70] sm:$0xff]  ;;  %v644_v4 = vld [vmem:[%s2091_s1 + $0x68] sm:$0xff]  ;;  %s2129_s26 = smov (!%p217_p3, %s1330_s26), 31  ;;  %v230_v19 = vlaneseq }
   0xc   : > { %v662_v2 = vld [vmem:[%s2091_s1 + $0xf8] sm:$0xff]  ;;  %1368 = vmatpush.msra.mxu2 %v646_v0  ;;  %v661_v3 = vld [vmem:[%s2091_s1 + $0xf0] sm:$0xff]  ;;  %v660_v5 = vld [vmem:[%s2091_s1 + $0xe8] sm:$0xff]  ;;  %683 = vmatpush.msra.mxu0 %v646_v0  ;;  %s1331_s12 = sshll.u32 %s2129_s26, 3 }
   0xd   : > { %1384 = vmatpush.msra.mxu3 %v662_v2  ;;  %748 = vmatpush.msra.mxu1 %v662_v2  ;;  %v643_v6 = vld [vmem:[%s2091_s1 + $0x60] sm:$0xff]  ;;  %v642_v8 = vld [vmem:[%s2091_s1 + $0x58] sm:$0xff]  ;;  %s1496_s20 = scalar_lea.vmem %s2090_s0, %s1331_s12  ;;  %v641_v10 = vld [vmem:[%s2091_s1 + $0x50] sm:$0xff]  ;;  %v1548_v26 = vshrl.u32 %v230_v19, 7  ;;  %s2039_s27 = scalar_lea.vmem %s2095_s5, %s1331_s12 }
   0xe   : > { %1369 = vmatpush.msra.mxu2 %v645_v1  ;;  %v659_v7 = vld [vmem:[%s2091_s1 + $0xe0] sm:$0xff]  ;;  %684 = vmatpush.msra.mxu0 %v645_v1  ;;  %v658_v9 = vld [vmem:[%s2091_s1 + $0xd8] sm:$0xff]  ;;  %v657_v11 = vld [vmem:[%s2091_s1 + $0xd0] sm:$0xff] }
   0xf   : > { %1385 = vmatpush.msra.mxu3 %v661_v3  ;;  %749 = vmatpush.msra.mxu1 %v661_v3  ;;  %v640_v12 = vld [vmem:[%s2091_s1 + $0x48] sm:$0xff]  ;;  %v1511_v14 = vld [vmem:[%s1496_s20 + $0x38] sm:$0xff]  ;;  %v1514_v15 = vld [vmem:[%s1496_s20 + $0x40] sm:$0xff]  ;;  %v239_v31 = vadd.s32 64, %v1548_v26  ;;  %v241_v50 = vadd.s32 80, %v1548_v26  ;;  %v243_v1 = vadd.s32 96, %v1548_v26 }
  0x10   : > { %1370 = vmatpush.msra.mxu2 %v644_v4  ;;  %685 = vmatpush.msra.mxu0 %v644_v4  ;;  %v656_v13 = vld [vmem:[%s2091_s1 + $0xc8] sm:$0xff]  ;;  %494 = vst [vmem:[#allocation2 + $0x39] sm:$0xff] %v1511_v14  ;;  %v639_v16 = vld [vmem:[%s2091_s1 + $0x40] sm:$0xff]  ;;  %v1529_v20 = vld [vmem:[%s1496_s20 + $0x50] sm:$0xff] }
  0x11   : > { %1386 = vmatpush.msra.mxu3 %v660_v5  ;;  %750 = vmatpush.msra.mxu1 %v660_v5  ;;  %v655_v17 = vld [vmem:[%s2091_s1 + $0xc0] sm:$0xff]  ;;  %495 = vst [vmem:[#allocation2 + $0x41] sm:$0xff] %v1514_v15  ;;  %v1525_v18 = vld [vmem:[%s1496_s20 + $0x48] sm:$0xff]  ;;  %v638_v21 = vld [vmem:[%s2091_s1 + $0x38] sm:$0xff]  ;;  %v307_v37 = vand.u32 15, %v239_v31  ;;  %v321_v54 = vand.u32 15, %v241_v50 }
  0x12   : > { %1371 = vmatpush.msra.mxu2 %v643_v6  ;;  %686 = vmatpush.msra.mxu0 %v643_v6  ;;  %496 = vst [vmem:[#allocation2 + $0x49] sm:$0xff] %v1525_v18  ;;  %v654_v22 = vld [vmem:[%s2091_s1 + $0xb8] sm:$0xff]  ;;  %v637_v24 = vld [vmem:[%s2091_s1 + $0x30] sm:$0xff]  ;;  %v636_v27 = vld [vmem:[%s2091_s1 + $0x28] sm:$0xff]  ;;  %v335_v6 = vand.u32 15, %v243_v1  ;;  %v236_v1 = vadd.s32 40, %v1548_v26 }
  0x13   : > { %1387 = vmatpush.msra.mxu3 %v659_v7  ;;  %751 = vmatpush.msra.mxu1 %v659_v7  ;;  %497 = vst [vmem:[#allocation2 + $0x51] sm:$0xff] %v1529_v20  ;;  %v1539_v23 = vld [vmem:[%s1496_s20 + $0x58] sm:$0xff]  ;;  %v653_v25 = vld [vmem:[%s2091_s1 + $0xb0] sm:$0xff]  ;;  %v652_v28 = vld [vmem:[%s2091_s1 + $0xa8] sm:$0xff]  ;;  %vm1591_vm0 = vcmp.ne.s32.totalorder %v307_v37, 0  ;;  %vm1632_vm1 = vcmp.ne.s32.totalorder %v321_v54, 0 }
  0x14   : > { %1372 = vmatpush.msra.mxu2 %v642_v8  ;;  %687 = vmatpush.msra.mxu0 %v642_v8  ;;  %498 = vst [vmem:[#allocation2 + $0x59] sm:$0xff] %v1539_v23  ;;  %v635_v29 = vld [vmem:[%s2091_s1 + $0x20] sm:$0xff]  ;;  %v634_v32 = vld [vmem:[%s2091_s1 + $0x18] sm:$0xff]  ;;  %v633_v35 = vld [vmem:[%s2091_s1 + $0x10] sm:$0xff]  ;;  %v1419_v8 = vmov 0.0   ;;  %vm1678_vm2 = vcmp.ne.s32.totalorder %v335_v6, 0 }
  0x15   : > { %1388 = vmatpush.msra.mxu3 %v658_v9  ;;  %752 = vmatpush.msra.mxu1 %v658_v9  ;;  %v651_v30 = vld [vmem:[%s2091_s1 + $0xa0] sm:$0xff]  ;;  %v650_v33 = vld [vmem:[%s2091_s1 + $0x98] sm:$0xff]  ;;  %v649_v36 = vld [vmem:[%s2091_s1 + $0x90] sm:$0xff]  ;;  %228 = vst [vmem:[#allocation2] sm:$0x1] %v1419_v8  ;;  %v237_v54 = vadd.s32 48, %v1548_v26 }
  0x16   : > { %1373 = vmatpush.msra.mxu2 %v641_v10  ;;  %688 = vmatpush.msra.mxu0 %v641_v10  ;;  %v1570_v34 = vld [vmem:[%s1496_s20 + $0x60] sm:$0xff]  ;;  %v632_v38 = vld [vmem:[%s2091_s1 + $0x8] sm:$0xff]  ;;  %v678_v44 = vld [vmem:[%s2091_s1 + $0x178] sm:$0xff]  ;;  %229 = vst [vmem:[#allocation2 + $0x81] sm:$0x1] %v1419_v8  ;;  %v238_v8 = vadd.s32 56, %v1548_v26 }
  0x17   : > { %1389 = vmatpush.msra.mxu3 %v657_v11  ;;  %753 = vmatpush.msra.mxu1 %v657_v11  ;;  %499 = vst [vmem:[#allocation2 + $0x61] sm:$0xff] %v1570_v34  ;;  %v648_v39 = vld [vmem:[%s2091_s1 + $0x88] sm:$0xff]  ;;  %v631_v40 = vld [vmem:[%s2091_s1] sm:$0xff]  ;;  %v677_v46 = vld [vmem:[%s2091_s1 + $0x170] sm:$0xff] }
  0x18   : > { %1374 = vmatpush.msra.mxu2 %v640_v12  ;;  %689 = vmatpush.msra.mxu0 %v640_v12  ;;  %v647_v41 = vld [vmem:[%s2091_s1 + $0x80] sm:$0xff]  ;;  %v1599_v45 = vld [vmem:[%s1496_s20 + $0x68] sm:$0xff]  ;;  %v674_v51 = vld [vmem:[%s2091_s1 + $0x158] sm:$0xff]  ;;  %v251_v12 = vand.u32 15, %v1548_v26 }
  0x19   : > { %1390 = vmatpush.msra.mxu3 %v656_v13  ;;  %754 = vmatpush.msra.mxu1 %v656_v13  ;;  %v511_v43 = vld [vmem:[#allocation2 + $0x40] sm:$0xff]  ;;  %500 = vst [vmem:[#allocation2 + $0x69] sm:$0xff] %v1599_v45  ;;  %v676_v47 = vld [vmem:[%s2091_s1 + $0x168] sm:$0xff]  ;;  %v1619_v52 = vld [vmem:[%s1496_s20 + $0x70] sm:$0xff] }
  0x1a   : > { %1375 = vmatpush.msra.mxu2 %v639_v16  ;;  %690 = vmatpush.msra.mxu0 %v639_v16  ;;  %v675_v48 = vld [vmem:[%s2091_s1 + $0x160] sm:$0xff]  ;;  %v512_v49 = vld [vmem:[#allocation2 + $0x48] sm:$0xff]  ;;  %v673_v53 = vld [vmem:[%s2091_s1 + $0x150] sm:$0xff]  ;;  %501 = vst [vmem:[#allocation2 + $0x71] sm:$0xff] %v1619_v52  ;;  %vm1690_vm3 = vcmp.ne.s32.totalorder %v251_v12, 0 }
  0x1b   : > { %1391 = vmatpush.msra.mxu3 %v655_v17  ;;  %755 = vmatpush.msra.mxu1 %v655_v17  ;;  %v672_v55 = vld [vmem:[%s2091_s1 + $0x148] sm:$0xff]  ;;  %v671_v56 = vld [vmem:[%s2091_s1 + $0x140] sm:$0xff]  ;;  %v513_v58 = vld [vmem:[#allocation2 + $0x50] sm:$0xff] }
  0x1c   : > { %1376 = vmatpush.msra.mxu2 %v638_v21  ;;  %691 = vmatpush.msra.mxu0 %v638_v21  ;;  %v670_v59 = vld [vmem:[%s2091_s1 + $0x138] sm:$0xff]  ;;  %v669_v61 = vld [vmem:[%s2091_s1 + $0x130] sm:$0xff]  ;;  %v668_v62 = vld [vmem:[%s2091_s1 + $0x128] sm:$0xff]  ;;  %v245_v21 = vadd.s32 112, %v1548_v26 }
  0x1d   : > { %1392 = vmatpush.msra.mxu3 %v654_v22  ;;  %756 = vmatpush.msra.mxu1 %v654_v22  ;;  %v1640_v60 = vld [vmem:[%s1496_s20 + $0x78] sm:$0xff]  ;;  %v667_v63 = vld [vmem:[%s2091_s1 + $0x120] sm:$0xff]  ;;  %v1663_v4 = vld [vmem:[%s1496_s20 + $0x8] sm:$0xff] }
  0x1e   : > { %1377 = vmatpush.msra.mxu2 %v637_v24  ;;  %692 = vmatpush.msra.mxu0 %v637_v24  ;;  %502 = vst [vmem:[#allocation2 + $0x79] sm:$0xff] %v1640_v60  ;;  %v514_v0 = vld [vmem:[#allocation2 + $0x58] sm:$0xff]  ;;  %v1660_v3 = vld [vmem:[%s1496_s20] sm:$0xff]  ;;  %v665_v5 = vld [vmem:[%s2091_s1 + $0x110] sm:$0xff] }
  0x1f   : > { %1393 = vmatpush.msra.mxu3 %v653_v25  ;;  %757 = vmatpush.msra.mxu1 %v653_v25  ;;  %v666_v2 = vld [vmem:[%s2091_s1 + $0x118] sm:$0xff]  ;;  %487 = vst [vmem:[#allocation2 + $0x1] sm:$0xff] %v1660_v3  ;;  %v664_v7 = vld [vmem:[%s2091_s1 + $0x108] sm:$0xff]  ;;  %v663_v9 = vld [vmem:[%s2091_s1 + $0x100] sm:$0xff]  ;;  %v349_v25 = vand.u32 15, %v245_v21 }
  0x20   : > { %1378 = vmatpush.msra.mxu2 %v636_v27  ;;  %693 = vmatpush.msra.mxu0 %v636_v27  ;;  %488 = vst [vmem:[#allocation2 + $0x9] sm:$0xff] %v1663_v4  ;;  %v515_v11 = vld [vmem:[#allocation2 + $0x60] sm:$0xff]  ;;  %v1684_v13 = vld [vmem:[%s1496_s20 + $0x10] sm:$0xff]  ;;  %v516_v19 = vld [vmem:[#allocation2 + $0x68] sm:$0xff] }
  0x21   : > { %1394 = vmatpush.msra.mxu3 %v652_v28  ;;  %758 = vmatpush.msra.mxu1 %v652_v28  ;;  %489 = vst [vmem:[#allocation2 + $0x11] sm:$0xff] %v1684_v13  ;;  %v1699_v22 = vld [vmem:[%s1496_s20 + $0x18] sm:$0xff]  ;;  %vm1704_vm4 = vcmp.ne.s32.totalorder %v349_v25, 0  ;;  %v517_v28 = vld [vmem:[#allocation2 + $0x70] sm:$0xff]  ;;  %v1710_v31 = vld [vmem:[%s1496_s20 + $0x20] sm:$0xff] }
  0x22   : > { %1379 = vmatpush.msra.mxu2 %v635_v29  ;;  %694 = vmatpush.msra.mxu0 %v635_v29  ;;  %490 = vst [vmem:[#allocation2 + $0x19] sm:$0xff] %v1699_v22  ;;  %v233_v29 = vadd.s32 16, %v1548_v26  ;;  %v988_v12 = vld [vmem:[%s2093_s3 + $0x70] sm:$0xff]  ;;  %v987_v21 = vld [vmem:[%s2093_s3 + $0x68] sm:$0xff]  ;;  %v1021_v25 = vld [vmem:[%s2093_s3 + $0x178] sm:$0xff] }
  0x23   : > { %1395 = vmatpush.msra.mxu3 %v651_v30  ;;  %759 = vmatpush.msra.mxu1 %v651_v30  ;;  %491 = vst [vmem:[#allocation2 + $0x21] sm:$0xff] %v1710_v31 }
  0x24   : > { %1380 = vmatpush.msra.mxu2 %v634_v32  ;;  %695 = vmatpush.msra.mxu0 %v634_v32  ;;  %v265_v30 = vand.u32 15, %v233_v29  ;;  %v1004_v29 = vld [vmem:[%s2093_s3 + $0xf0] sm:$0xff] }
  0x25   : > { %1396 = vmatpush.msra.mxu3 %v650_v33  ;;  %760 = vmatpush.msra.mxu1 %v650_v33 }
  0x26   : > { %1381 = vmatpush.msra.mxu2 %v633_v35  ;;  %696 = vmatpush.msra.mxu0 %v633_v35  ;;  %v503_v17 = vld [vmem:[#allocation2] sm:$0xff]  ;;  %vm1716_vm5 = vcmp.ne.s32.totalorder %v265_v30, 0  ;;  %v518_v35 = vld [vmem:[#allocation2 + $0x78] sm:$0xff] }
  0x27   : > { %1397 = vmatpush.msra.mxu3 %v649_v36  ;;  %761 = vmatpush.msra.mxu1 %v649_v36  ;;  %v504_v24 = vld [vmem:[#allocation2 + $0x8] sm:$0xff] }
  0x28   : > { %1382 = vmatpush.msra.mxu2 %v632_v38  ;;  %697 = vmatpush.msra.mxu0 %v632_v38  ;;  %v505_v32 = vld [vmem:[#allocation2 + $0x10] sm:$0xff]  ;;  %v1724_v36 = vld [vmem:[%s1496_s20 + $0x28] sm:$0xff] }
  0x29   : > { %1398 = vmatpush.msra.mxu3 %v648_v39  ;;  %762 = vmatpush.msra.mxu1 %v648_v39  ;;  %v506_v37 = vld [vmem:[#allocation2 + $0x18] sm:$0xff]  ;;  %492 = vst [vmem:[#allocation2 + $0x29] sm:$0xff] %v1724_v36  ;;  %v567_v38 = vld [vmem:[#allocation2 + $0x2] sm:$0xff]  ;;  %v232_v39 = vadd.s32 8, %v1548_v26 }
  0x2a   : > { %1383 = vmatpush.msra.mxu2 %v631_v40  ;;  %698 = vmatpush.msra.mxu0 %v631_v40  ;;  %v235_v40 = vadd.s32 32, %v1548_v26  ;;  %v575_v30 = vld [vmem:[#allocation2 + $0x42] sm:$0xff] }
  0x2b   : > { %1399 = vmatpush.msra.mxu3 %v647_v41  ;;  %1338 = vmatmul.msk.f32.vlgmr.msra.gmra.mxu2 %vm1591_vm0, %v511_v43  ;;  %v1732_v43 = vld [vmem:[%s1496_s20 + $0x30] sm:$0xff] }
  0x2c   : > { %788 = vmatmul.f32.vlgmr.msra.gmra.mxu3 %v1514_v15  ;;  %813 = vmatpush.msrb.mxu2 %v678_v44  ;;  %v507_v44 = vld [vmem:[#allocation2 + $0x20] sm:$0xff]  ;;  %493 = vst [vmem:[#allocation2 + $0x31] sm:$0xff] %v1732_v43 }
  0x2d   : > { %763 = vmatpush.msra.mxu1 %v647_v41  ;;  %1334 = vmatmul.msk.f32.vlgmr.msra.gmra.mxu0 %vm1690_vm3, %v503_v17  ;;  %v279_v41 = vand.u32 15, %v235_v40 }
  0x2e   : > { %814 = vmatpush.msrb.mxu2 %v677_v46  ;;  %764 = vmatmul.f32.vlgmr.msra.gmra.mxu1 %v1660_v3  ;;  %v258_v46 = vand.u32 15, %v232_v39  ;;  %v1019_v39 = vld [vmem:[%s2093_s3 + $0x168] sm:$0xff] }
  0x2f   : > { %vm1735_vm6 = vcmp.ne.s32.totalorder %v279_v41, 0  ;;  %1156 = vmatpush.msrb.mxu1 %v1021_v25  ;;  %v979_v25 = vld [vmem:[%s2093_s3 + $0x28] sm:$0xff] }
  0x30   : > { %815 = vmatpush.msrb.mxu2 %v676_v47  ;;  %vm1742_vm7 = vcmp.ne.s32.totalorder %v258_v46, 15  ;;  %v508_v50 = vld [vmem:[#allocation2 + $0x28] sm:$0xff]  ;;  %v1002_v46 = vld [vmem:[%s2093_s3 + $0xe0] sm:$0xff] }
  0x32   : > { %816 = vmatpush.msrb.mxu2 %v675_v48 }
  0x33   : > { %726 = vmatmul.f32.gmra.mxu2 %v512_v49  ;;  %v568_v49 = vld [vmem:[#allocation2 + $0xa] sm:$0xff] }
  0x34   : > { %791 = vmatmul.f32.gmra.mxu3 %v1525_v18  ;;  %817 = vmatpush.msrb.mxu2 %v674_v51  ;;  %v569_v51 = vld [vmem:[#allocation2 + $0x12] sm:$0xff]  ;;  %v572_v6 = vld [vmem:[#allocation2 + $0x2a] sm:$0xff] }
  0x35   : > { %702 = vmatmul.f32.gmra.mxu0 %v504_v24  ;;  %v1005_v24 = vld [vmem:[%s2093_s3 + $0xf8] sm:$0xff] }
  0x36   : > { %818 = vmatpush.msrb.mxu2 %v673_v53  ;;  %767 = vmatmul.f32.gmra.mxu1 %v1663_v4  ;;  %v234_v53 = vadd.s32 24, %v1548_v26 }
  0x37   : > { %1091 = vmatpush.msrb.mxu0 %v1005_v24  ;;  %v1014_v24 = vld [vmem:[%s2093_s3 + $0x140] sm:$0xff] }
  0x38   : > { %819 = vmatpush.msrb.mxu2 %v672_v55  ;;  %v293_v55 = vand.u32 15, %v237_v54  ;;  %v1001_v54 = vld [vmem:[%s2093_s3 + $0xd8] sm:$0xff] }
  0x39   : > { %1092 = vmatpush.msrb.mxu0 %v1004_v29  ;;  %v1013_v29 = vld [vmem:[%s2093_s3 + $0x138] sm:$0xff] }
  0x3a   : > { %820 = vmatpush.msrb.mxu2 %v671_v56  ;;  %v509_v56 = vld [vmem:[#allocation2 + $0x30] sm:$0xff]  ;;  %vm1751_vm8 = vcmp.ne.s32.totalorder %v293_v55, 0  ;;  %v1017_v55 = vld [vmem:[%s2093_s3 + $0x158] sm:$0xff] }
  0x3b   : > { %1339 = vmatmul.msk.f32.gmra.mxu2 %vm1632_vm1, %v513_v58  ;;  %v272_v58 = vand.u32 15, %v234_v53  ;;  %v983_v53 = vld [vmem:[%s2093_s3 + $0x48] sm:$0xff] }
  0x3c   : > { %794 = vmatmul.f32.gmra.mxu3 %v1529_v20  ;;  %821 = vmatpush.msrb.mxu2 %v670_v59 }
  0x3d   : > { %1335 = vmatmul.msk.f32.gmra.mxu0 %vm1716_vm5, %v505_v32  ;;  %vm1758_vm9 = vcmp.ne.s32.totalorder %v272_v58, 15  ;;  %v240_v32 = vadd.s32 72, %v1548_v26  ;;  %v982_v58 = vld [vmem:[%s2093_s3 + $0x40] sm:$0xff] }
  0x3e   : > { %822 = vmatpush.msrb.mxu2 %v669_v61  ;;  %770 = vmatmul.f32.gmra.mxu1 %v1684_v13 }
  0x3f   : > { %v314_v40 = vand.u32 15, %v240_v32 }
  0x40   : > { %823 = vmatpush.msrb.mxu2 %v668_v62  ;;  %v570_v62 = vld [vmem:[#allocation2 + $0x1a] sm:$0xff] }
  0x41   : > { %vm1820_vm12 = vcmp.ne.s32.totalorder %v314_v40, 15  ;;  %v1012_v40 = vld [vmem:[%s2093_s3 + $0x130] sm:$0xff] }
  0x42   : > { %824 = vmatpush.msrb.mxu2 %v667_v63  ;;  %v510_v63 = vld [vmem:[#allocation2 + $0x38] sm:$0xff] }
  0x43   : > { %732 = vmatmul.f32.gmra.mxu2 %v514_v0  ;;  %v571_v0 = vld [vmem:[#allocation2 + $0x22] sm:$0xff] }
  0x44   : > { %797 = vmatmul.f32.gmra.mxu3 %v1539_v23  ;;  %825 = vmatpush.msrb.mxu2 %v666_v2  ;;  %v286_v2 = vand.u32 15, %v236_v1  ;;  %v1016_v1 = vld [vmem:[%s2093_s3 + $0x150] sm:$0xff] }
  0x45   : > { %708 = vmatmul.f32.gmra.mxu0 %v506_v37  ;;  %v985_v37 = vld [vmem:[%s2093_s3 + $0x58] sm:$0xff] }
  0x46   : > { %826 = vmatpush.msrb.mxu2 %v665_v5  ;;  %773 = vmatmul.f32.gmra.mxu1 %v1699_v22  ;;  %vm1765_vm10 = vcmp.ne.s32.totalorder %v286_v2, 15  ;;  %v981_v2 = vld [vmem:[%s2093_s3 + $0x38] sm:$0xff] }
  0x48   : > { %827 = vmatpush.msrb.mxu2 %v664_v7  ;;  %v573_v7 = vld [vmem:[#allocation2 + $0x32] sm:$0xff] }
  0x4a   : > { %828 = vmatpush.msrb.mxu2 %v663_v9  ;;  %v989_v9 = vld [vmem:[%s2093_s3 + $0x78] sm:$0xff] }
  0x4b   : > { %1340 = vmatmul.msk.f32.gmra.mxu2 %vm1678_vm2, %v515_v11  ;;  %v300_v11 = vand.u32 15, %v238_v8  ;;  %1026 = vmatpush.msrb.mxu3 %v989_v9 }
  0x4c   : > { %800 = vmatmul.f32.gmra.mxu3 %v1570_v34 }
  0x4d   : > { %1336 = vmatmul.msk.f32.gmra.mxu0 %vm1735_vm6, %v507_v44  ;;  %vm1778_vm11 = vcmp.ne.s32.totalorder %v300_v11, 15  ;;  %1027 = vmatpush.msrb.mxu3 %v988_v12  ;;  %v984_v44 = vld [vmem:[%s2093_s3 + $0x50] sm:$0xff]  ;;  %v998_v12 = vld [vmem:[%s2093_s3 + $0xc0] sm:$0xff] }
  0x4e   : > { %776 = vmatmul.f32.gmra.mxu1 %v1710_v31  ;;  %v980_v11 = vld [vmem:[%s2093_s3 + $0x30] sm:$0xff] }
  0x4f   : > { %1028 = vmatpush.msrb.mxu3 %v987_v21  ;;  %v578_v21 = vld [vmem:[#allocation2 + $0x5a] sm:$0xff] }
  0x53   : > { %738 = vmatmul.f32.gmra.mxu2 %v516_v19  ;;  %v574_v19 = vld [vmem:[#allocation2 + $0x3a] sm:$0xff] }
  0x54   : > { %803 = vmatmul.f32.gmra.mxu3 %v1599_v45 }
  0x55   : > { %714 = vmatmul.f32.gmra.mxu0 %v508_v50  ;;  %v576_v50 = vld [vmem:[#allocation2 + $0x4a] sm:$0xff] }
  0x56   : > { %779 = vmatmul.f32.gmra.mxu1 %v1724_v36 }
  0x5b   : > { %1341 = vmatmul.msk.f32.gmra.mxu2 %vm1704_vm4, %v517_v28  ;;  %v986_v28 = vld [vmem:[%s2093_s3 + $0x60] sm:$0xff] }
  0x5c   : > { %806 = vmatmul.f32.gmra.mxu3 %v1619_v52 }
  0x5d   : > { %1337 = vmatmul.msk.f32.gmra.mxu0 %vm1751_vm8, %v509_v56  ;;  %1029 = vmatpush.msrb.mxu3 %v986_v28  ;;  %v997_v28 = vld [vmem:[%s2093_s3 + $0xb8] sm:$0xff] }
  0x5e   : > { %782 = vmatmul.f32.gmra.mxu1 %v1732_v43 }
  0x5f   : > { %1030 = vmatpush.msrb.mxu3 %v985_v37  ;;  %v995_v37 = vld [vmem:[%s2093_s3 + $0xa8] sm:$0xff] }
  0x61   : > { %1031 = vmatpush.msrb.mxu3 %v984_v44  ;;  %v994_v44 = vld [vmem:[%s2093_s3 + $0xa0] sm:$0xff] }
  0x63   : > { %744 = vmatmul.f32.gmra.mxu2 %v518_v35  ;;  %v1020_v35 = vld [vmem:[%s2093_s3 + $0x170] sm:$0xff]  ;;  %1032 = vmatpush.msrb.mxu3 %v983_v53 }
  0x64   : > { %809 = vmatmul.f32.gmra.mxu3 %v1640_v60  ;;  %1157 = vmatpush.msrb.mxu1 %v1020_v35  ;;  %v978_v35 = vld [vmem:[%s2093_s3 + $0x20] sm:$0xff] }
  0x65   : > { %720 = vmatmul.f32.gmra.mxu0 %v510_v63  ;;  %v577_v63 = vld [vmem:[#allocation2 + $0x52] sm:$0xff]  ;;  %1033 = vmatpush.msrb.mxu3 %v982_v58  ;;  %v991_v58 = vld [vmem:[%s2093_s3 + $0x88] sm:$0xff] }
  0x66   : > { %785 = vmatmul.f32.gmra.mxu1 %v1511_v14 }
  0x67   : > { %1158 = vmatpush.msrb.mxu1 %v1019_v39  ;;  %1034 = vmatpush.msrb.mxu3 %v981_v2  ;;  %v244_v39 = vadd.s32 104, %v1548_v26  ;;  %v1010_v2 = vld [vmem:[%s2093_s3 + $0x120] sm:$0xff] }
  0x69   : > { %1035 = vmatpush.msrb.mxu3 %v980_v11  ;;  %v342_v53 = vand.u32 15, %v244_v39  ;;  %v1006_v39 = vld [vmem:[%s2093_s3 + $0x100] sm:$0xff] }
  0x6b   : > { %829 = vmatmul.f32.vlgmr.msrb.gmra.mxu2 %v567_v38  ;;  %v1003_v38 = vld [vmem:[%s2093_s3 + $0xe8] sm:$0xff]  ;;  %1036 = vmatpush.msrb.mxu3 %v979_v25  ;;  %vm1920_vm14 = vcmp.ne.s32.totalorder %v342_v53, 15 }
  0x6c   : > { %1093 = vmatpush.msrb.mxu0 %v1003_v38  ;;  %v579_v38 = vld [vmem:[#allocation2 + $0x62] sm:$0xff] }
  0x6d   : > { %1037 = vmatpush.msrb.mxu3 %v978_v35 }
  0x6e   : > { %1094 = vmatpush.msrb.mxu0 %v1002_v46  ;;  %v977_v46 = vld [vmem:[%s2093_s3 + $0x18] sm:$0xff] }
  0x6f   : > { %1038 = vmatpush.msrb.mxu3 %v977_v46 }
  0x70   : > { %1095 = vmatpush.msrb.mxu0 %v1001_v54  ;;  %v992_v54 = vld [vmem:[%s2093_s3 + $0x90] sm:$0xff] }
  0x73   : > { %1342 = vmatmul.msk.f32.gmra.mxu2 %vm1742_vm7, %v568_v49 }
  0x7b   : > { %835 = vmatmul.f32.gmra.mxu2 %v569_v51  ;;  %v1018_v51 = vld [vmem:[%s2093_s3 + $0x160] sm:$0xff] }
  0x7c   : > { %1159 = vmatpush.msrb.mxu1 %v1018_v51  ;;  %v1011_v51 = vld [vmem:[%s2093_s3 + $0x128] sm:$0xff] }
  0x7e   : > { %1160 = vmatpush.msrb.mxu1 %v1017_v55 }
  0x80   : > { %1161 = vmatpush.msrb.mxu1 %v1016_v1  ;;  %v976_v1 = vld [vmem:[%s2093_s3 + $0x10] sm:$0xff] }
  0x81   : > { %1039 = vmatpush.msrb.mxu3 %v976_v1 }
  0x83   : > { %1343 = vmatmul.msk.f32.gmra.mxu2 %vm1758_vm9, %v570_v62  ;;  %v1000_v62 = vld [vmem:[%s2093_s3 + $0xd0] sm:$0xff] }
  0x84   : > { %1096 = vmatpush.msrb.mxu0 %v1000_v62 }
  0x8b   : > { %841 = vmatmul.f32.gmra.mxu2 %v571_v0  ;;  %v242_v0 = vadd.s32 88, %v1548_v26 }
  0x8d   : > { %v328_v8 = vand.u32 15, %v242_v0  ;;  %v990_v0 = vld [vmem:[%s2093_s3 + $0x80] sm:$0xff] }
  0x8f   : > { %vm1867_vm13 = vcmp.ne.s32.totalorder %v328_v8, 15 }
  0x93   : > { %1344 = vmatmul.msk.f32.gmra.mxu2 %vm1765_vm10, %v572_v6  ;;  %v999_v6 = vld [vmem:[%s2093_s3 + $0xc8] sm:$0xff] }
  0x94   : > { %1097 = vmatpush.msrb.mxu0 %v999_v6  ;;  %v975_v6 = vld [vmem:[%s2093_s3 + $0x8] sm:$0xff] }
  0x95   : > { %1040 = vmatpush.msrb.mxu3 %v975_v6 }
  0x96   : > { %1098 = vmatpush.msrb.mxu0 %v998_v12  ;;  %v581_v12 = vld [vmem:[#allocation2 + $0x72] sm:$0xff] }
  0x98   : > { %1099 = vmatpush.msrb.mxu0 %v997_v28  ;;  %v1008_v28 = vld [vmem:[%s2093_s3 + $0x110] sm:$0xff] }
  0x9b   : > { %847 = vmatmul.f32.gmra.mxu2 %v573_v7  ;;  %v1015_v7 = vld [vmem:[%s2093_s3 + $0x148] sm:$0xff] }
  0x9c   : > { %1162 = vmatpush.msrb.mxu1 %v1015_v7  ;;  %v1009_v7 = vld [vmem:[%s2093_s3 + $0x118] sm:$0xff] }
  0x9e   : > { %1163 = vmatpush.msrb.mxu1 %v1014_v24  ;;  %v974_v24 = vld [vmem:[%s2093_s3] sm:$0xff] }
  0x9f   : > { %1041 = vmatpush.msrb.mxu3 %v974_v24 }
  0xa0   : > { %1164 = vmatpush.msrb.mxu1 %v1013_v29  ;;  %v1007_v29 = vld [vmem:[%s2093_s3 + $0x108] sm:$0xff] }
  0xa2   : > { %1165 = vmatpush.msrb.mxu1 %v1012_v40 }
  0xa3   : > { %1345 = vmatmul.msk.f32.gmra.mxu2 %vm1778_vm11, %v574_v19 }
  0xa4   : > { %1166 = vmatpush.msrb.mxu1 %v1011_v51 }
  0xa6   : > { %1167 = vmatpush.msrb.mxu1 %v1010_v2 }
  0xa8   : > { %1168 = vmatpush.msrb.mxu1 %v1009_v7 }
  0xaa   : > { %v700_v11 = vpop.f32.mrf.mxu0  ;;  %1169 = vmatpush.msrb.mxu1 %v1008_v28 }
  0xab   : > { %853 = vmatmul.f32.gmra.mxu2 %v575_v30  ;;  %v996_v30 = vld [vmem:[%s2093_s3 + $0xb0] sm:$0xff]  ;;  %v765_v25 = vpop.f32.mrf.mxu1 }
  0xac   : > { %1100 = vmatpush.msrb.mxu0 %v996_v30  ;;  %1170 = vmatpush.msrb.mxu1 %v1007_v29 }
  0xae   : > { %v1812_v41 = vpop.f32.mrf.mxu2  ;;  %1101 = vmatpush.msrb.mxu0 %v995_v37  ;;  %v582_v37 = vld [vmem:[#allocation2 + $0x7a] sm:$0xff]  ;;  %1171 = vmatpush.msrb.mxu1 %v1006_v39 }
  0xb0   : > { %1102 = vmatpush.msrb.mxu0 %v994_v44  ;;  %v1967_v44 = vld [vmem:[%s2092_s2] ss:$0 sm:$0xff] }
  0xb1   : > { %v725_v61 = vadd.f32 %v1967_v44, %v1812_v41 }
  0xb3   : > { %1346 = vmatmul.msk.f32.gmra.mxu2 %vm1820_vm12, %v576_v50  ;;  %v993_v50 = vld [vmem:[%s2093_s3 + $0x98] sm:$0xff]  ;;  %v768_v40 = vpop.f32.mrf.mxu1 }
  0xb4   : > { %1103 = vmatpush.msrb.mxu0 %v993_v50  ;;  %v701_v50 = vadd.f32 %v1967_v44, %v700_v11 }
  0xb6   : > { %v1838_v56 = vpop.f32.mrf.mxu2  ;;  %1104 = vmatpush.msrb.mxu0 %v992_v54  ;;  %v766_v53 = vadd.f32 %v765_v25, %v701_v50 }
  0xb8   : > { %1105 = vmatpush.msrb.mxu0 %v991_v58 }
  0xba   : > { %1106 = vmatpush.msrb.mxu0 %v990_v0 }
  0xbb   : > { %859 = vmatmul.f32.gmra.mxu2 %v577_v63  ;;  %v580_v63 = vld [vmem:[#allocation2 + $0x6a] sm:$0xff]  ;;  %v771_v58 = vpop.f32.mrf.mxu1 }
  0xbe   : > { %v1859_v9 = vpop.f32.mrf.mxu2 }
  0xbf   : > { %v731_v5 = vadd.f32 %v1967_v44, %v1859_v9 }
  0xc3   : > { %1347 = vmatmul.msk.f32.gmra.mxu2 %vm1867_vm13, %v578_v21  ;;  %v246_v21 = vadd.s32 120, %v1548_v26  ;;  %v774_v24 = vpop.f32.mrf.mxu1 }
  0xc5   : > { %v356_v30 = vand.u32 15, %v246_v21 }
  0xc6   : > { %v1888_v32 = vpop.f32.mrf.mxu2 }
  0xc7   : > { %vm1955_vm15 = vcmp.ne.s32.totalorder %v356_v30, 15 }
  0xcb   : > { %865 = vmatmul.f32.gmra.mxu2 %v579_v38  ;;  %v703_v38 = vpop.f32.mrf.mxu0 }
  0xcc   : > { %v704_v0 = vadd.f32 %v1967_v44, %v703_v38 }
  0xce   : > { %v1915_v55 = vpop.f32.mrf.mxu2  ;;  %v769_v2 = vadd.f32 %v768_v40, %v704_v0 }
  0xcf   : > { %v737_v17 = vadd.f32 %v1967_v44, %v1915_v55 }
  0xd3   : > { %1348 = vmatmul.msk.f32.gmra.mxu2 %vm1920_vm14, %v580_v63  ;;  %v706_v51 = vpop.f32.mrf.mxu0 }
  0xd4   : > { %v707_v21 = vadd.f32 %v1967_v44, %v706_v51 }
  0xd6   : > { %v1941_v8 = vpop.f32.mrf.mxu2  ;;  %v772_v11 = vadd.f32 %v771_v58, %v707_v21 }
  0xdb   : > { %871 = vmatmul.f32.gmra.mxu2 %v581_v12  ;;  %v709_v6 = vpop.f32.mrf.mxu0 }
  0xdc   : > { %v710_v38 = vadd.f32 %v1967_v44, %v709_v6 }
  0xde   : > { %v1953_v35 = vpop.f32.mrf.mxu2  ;;  %v775_v51 = vadd.f32 %v774_v24, %v710_v38 }
  0xdf   : > { %v743_v49 = vadd.f32 %v1967_v44, %v1953_v35 }
  0xe3   : > { %1349 = vmatmul.msk.f32.gmra.mxu2 %vm1955_vm15, %v582_v37  ;;  %v712_v30 = vpop.f32.mrf.mxu0 }
  0xe4   : > { %v713_v16 = vadd.f32 %v1967_v44, %v712_v30 }
  0xe6   : > { %v1969_v46 = vpop.f32.mrf.mxu2 }
  0xeb   : > { %v715_v0 = vpop.f32.mrf.mxu0 }
  0xec   : > { %v716_v24 = vadd.f32 %v1967_v44, %v715_v0 }
  0xee   : > { %v830_v54 = vpop.f32.mrf.mxu2 }
  0xef   : > { %v831_v63 = vadd.f32 %v830_v54, %v766_v53  ;;  %v777_v53 = vpop.f32.mrf.mxu1 }
  0xf0   : > { %v778_v6 = vadd.f32 %v777_v53, %v713_v16 }
  0xf1   : > { %v878_v1 = vmax.f32 %v831_v63, 0.0 }
  0xf3   : > { %894 = vst [vmem:[#allocation2 + $0x1] sm:$0xff] %v878_v1  ;;  %1107 = vmatmul.f32.vlgmr.msrb.gmra.mxu0 %v878_v1 }
  0xf6   : > { %v833_v7 = vpop.f32.mrf.mxu2 }
  0xf7   : > { %v834_v12 = vadd.f32 %v833_v7, %v769_v2  ;;  %v780_v7 = vpop.f32.mrf.mxu1 }
  0xf8   : > { %v781_v30 = vadd.f32 %v780_v7, %v716_v24 }
  0xf9   : > { %v879_v28 = vmax.f32 %v834_v12, 0.0 }
  0xfa   : > { %v910_v29 = vld [vmem:[#allocation2] sm:$0xff] }
  0xfb   : > { %895 = vst [vmem:[#allocation2 + $0x9] sm:$0xff] %v879_v28  ;;  %1350 = vmatmul.msk.f32.vlgmr.msrb.gmra.mxu3 %vm1690_vm3, %v910_v29  ;;  %1110 = vmatmul.f32.gmra.mxu0 %v879_v28 }
  0xfe   : > { %v836_v25 = vpop.f32.mrf.mxu2 }
  0xff   : > { %v837_v37 = vadd.f32 %v836_v25, %v772_v11  ;;  %v718_v25 = vpop.f32.mrf.mxu0 }
 0x100   : > { %v719_v48 = vadd.f32 %v1967_v44, %v718_v25 }
 0x101   : > { %v880_v39 = vmax.f32 %v837_v37, 0.0  ;;  %v783_v37 = vpop.f32.mrf.mxu1 }
 0x102   : > { %v911_v40 = vld [vmem:[#allocation2 + $0x8] sm:$0xff]  ;;  %v784_v53 = vadd.f32 %v783_v37, %v719_v48  ;;  %v728_v37 = vadd.f32 %v1967_v44, %v1838_v56 }
 0x103   : > { %v942_v50 = vld [vmem:[#allocation2 + $0x2] sm:$0xff]  ;;  %896 = vst [vmem:[#allocation2 + $0x11] sm:$0xff] %v880_v39  ;;  %1045 = vmatmul.f32.gmra.mxu3 %v911_v40  ;;  %1113 = vmatmul.f32.gmra.mxu0 %v880_v39 }
 0x104   : > { %1172 = vmatmul.f32.vlgmr.msrb.gmra.mxu1 %v942_v50 }
 0x106   : > { %v839_v54 = vpop.f32.mrf.mxu2 }
 0x107   : > { %v840_v63 = vadd.f32 %v839_v54, %v775_v51  ;;  %v789_v51 = vpop.f32.mrf.mxu3  ;;  %v721_v54 = vpop.f32.mrf.mxu0 }
 0x108   : > { %v722_v0 = vadd.f32 %v1967_v44, %v721_v54 }
 0x109   : > { %v881_v58 = vmax.f32 %v840_v63, 0.0 }
 0x10a   : > { %v912_v1 = vld [vmem:[#allocation2 + $0x10] sm:$0xff] }
 0x10b   : > { %v943_v2 = vld [vmem:[#allocation2 + $0xa] sm:$0xff]  ;;  %897 = vst [vmem:[#allocation2 + $0x19] sm:$0xff] %v881_v58  ;;  %1351 = vmatmul.msk.f32.gmra.mxu3 %vm1716_vm5, %v912_v1  ;;  %1116 = vmatmul.f32.gmra.mxu0 %v881_v58  ;;  %v786_v58 = vpop.f32.mrf.mxu1 }
 0x10c   : > { %1358 = vmatmul.msk.f32.gmra.mxu1 %vm1742_vm7, %v943_v2  ;;  %v787_v47 = vadd.f32 %v786_v58, %v722_v0  ;;  %v734_v0 = vadd.f32 %v1967_v44, %v1888_v32 }
 0x10e   : > { %v842_v12 = vpop.f32.mrf.mxu2 }
 0x10f   : > { %v843_v21 = vadd.f32 %v842_v12, %v778_v6  ;;  %v792_v7 = vpop.f32.mrf.mxu3 }
 0x110   : > { %v793_v59 = vadd.f32 %v792_v7, %v728_v37 }
 0x111   : > { %v882_v28 = vmax.f32 %v843_v21, 0.0 }
 0x112   : > { %v913_v29 = vld [vmem:[#allocation2 + $0x18] sm:$0xff] }
 0x113   : > { %v944_v11 = vld [vmem:[#allocation2 + $0x12] sm:$0xff]  ;;  %898 = vst [vmem:[#allocation2 + $0x21] sm:$0xff] %v882_v28  ;;  %1051 = vmatmul.f32.gmra.mxu3 %v913_v29  ;;  %1119 = vmatmul.f32.gmra.mxu0 %v882_v28 }
 0x114   : > { %1178 = vmatmul.f32.gmra.mxu1 %v944_v11  ;;  %v790_v11 = vadd.f32 %v789_v51, %v725_v61 }
 0x116   : > { %v845_v33 = vpop.f32.mrf.mxu2 }
 0x117   : > { %v846_v38 = vadd.f32 %v845_v33, %v781_v30  ;;  %v795_v33 = vpop.f32.mrf.mxu3 }
 0x118   : > { %v796_v56 = vadd.f32 %v795_v33, %v731_v5 }
 0x119   : > { %v883_v39 = vmax.f32 %v846_v38, 0.0 }
 0x11a   : > { %v914_v40 = vld [vmem:[#allocation2 + $0x20] sm:$0xff] }
 0x11b   : > { %v945_v50 = vld [vmem:[#allocation2 + $0x1a] sm:$0xff]  ;;  %899 = vst [vmem:[#allocation2 + $0x29] sm:$0xff] %v883_v39  ;;  %1352 = vmatmul.msk.f32.gmra.mxu3 %vm1735_vm6, %v914_v40  ;;  %1122 = vmatmul.f32.gmra.mxu0 %v883_v39 }
 0x11c   : > { %1359 = vmatmul.msk.f32.gmra.mxu1 %vm1758_vm9, %v945_v50 }
 0x11e   : > { %v848_v63 = vpop.f32.mrf.mxu2 }
 0x11f   : > { %v849_v16 = vadd.f32 %v848_v63, %v784_v53  ;;  %v798_v53 = vpop.f32.mrf.mxu3 }
 0x120   : > { %v799_v42 = vadd.f32 %v798_v53, %v734_v0 }
 0x121   : > { %v884_v1 = vmax.f32 %v849_v16, 0.0 }
 0x122   : > { %v915_v2 = vld [vmem:[#allocation2 + $0x28] sm:$0xff] }
 0x123   : > { %v946_v6 = vld [vmem:[#allocation2 + $0x22] sm:$0xff]  ;;  %900 = vst [vmem:[#allocation2 + $0x31] sm:$0xff] %v884_v1  ;;  %1057 = vmatmul.f32.gmra.mxu3 %v915_v2  ;;  %1125 = vmatmul.f32.gmra.mxu0 %v884_v1 }
 0x124   : > { %1184 = vmatmul.f32.gmra.mxu1 %v946_v6 }
 0x126   : > { %v851_v12 = vpop.f32.mrf.mxu2 }
 0x127   : > { %v852_v21 = vadd.f32 %v851_v12, %v787_v47  ;;  %v801_v2 = vpop.f32.mrf.mxu3 }
 0x128   : > { %v802_v32 = vadd.f32 %v801_v2, %v737_v17 }
 0x129   : > { %v885_v24 = vmax.f32 %v852_v21, 0.0 }
 0x12a   : > { %v916_v28 = vld [vmem:[#allocation2 + $0x30] sm:$0xff] }
 0x12b   : > { %v947_v29 = vld [vmem:[#allocation2 + $0x2a] sm:$0xff]  ;;  %901 = vst [vmem:[#allocation2 + $0x39] sm:$0xff] %v885_v24  ;;  %1353 = vmatmul.msk.f32.gmra.mxu3 %vm1751_vm8, %v916_v28  ;;  %1128 = vmatmul.f32.gmra.mxu0 %v885_v24 }
 0x12c   : > { %1360 = vmatmul.msk.f32.gmra.mxu1 %vm1765_vm10, %v947_v29  ;;  %v740_v29 = vadd.f32 %v1967_v44, %v1941_v8 }
 0x12e   : > { %v854_v25 = vpop.f32.mrf.mxu2 }
 0x12f   : > { %v855_v30 = vadd.f32 %v854_v25, %v790_v11  ;;  %v804_v61 = vpop.f32.mrf.mxu3 }
 0x130   : > { %v805_v57 = vadd.f32 %v804_v61, %v740_v29 }
 0x131   : > { %v886_v38 = vmax.f32 %v855_v30, 0.0 }
 0x132   : > { %v917_v41 = vld [vmem:[#allocation2 + $0x38] sm:$0xff] }
 0x133   : > { %v948_v48 = vld [vmem:[#allocation2 + $0x32] sm:$0xff]  ;;  %902 = vst [vmem:[#allocation2 + $0x41] sm:$0xff] %v886_v38  ;;  %1063 = vmatmul.f32.gmra.mxu3 %v917_v41  ;;  %1131 = vmatmul.f32.gmra.mxu0 %v886_v38 }
 0x134   : > { %1190 = vmatmul.f32.gmra.mxu1 %v948_v48 }
 0x136   : > { %v857_v39 = vpop.f32.mrf.mxu2 }
 0x137   : > { %v858_v40 = vadd.f32 %v857_v39, %v793_v59  ;;  %v807_v37 = vpop.f32.mrf.mxu3 }
 0x138   : > { %v808_v8 = vadd.f32 %v807_v37, %v743_v49 }
 0x139   : > { %v887_v50 = vmax.f32 %v858_v40, 0.0  ;;  %v746_v40 = vadd.f32 %v1967_v44, %v1969_v46 }
 0x13a   : > { %v918_v51 = vld [vmem:[#allocation2 + $0x40] sm:$0xff] }
 0x13b   : > { %v949_v54 = vld [vmem:[#allocation2 + $0x3a] sm:$0xff]  ;;  %903 = vst [vmem:[#allocation2 + $0x49] sm:$0xff] %v887_v50  ;;  %1354 = vmatmul.msk.f32.gmra.mxu3 %vm1591_vm0, %v918_v51  ;;  %1134 = vmatmul.f32.gmra.mxu0 %v887_v50 }
 0x13c   : > { %1361 = vmatmul.msk.f32.gmra.mxu1 %vm1778_vm11, %v949_v54 }
 0x13e   : > { %v860_v63 = vpop.f32.mrf.mxu2 }
 0x13f   : > { %v861_v16 = vadd.f32 %v860_v63, %v796_v56  ;;  %v810_v50 = vpop.f32.mrf.mxu3 }
 0x140   : > { %v811_v10 = vadd.f32 %v810_v50, %v746_v40 }
 0x141   : > { %v888_v58 = vmax.f32 %v861_v16, 0.0 }
 0x142   : > { %v919_v9 = vld [vmem:[#allocation2 + $0x48] sm:$0xff] }
 0x143   : > { %v950_v1 = vld [vmem:[#allocation2 + $0x42] sm:$0xff]  ;;  %904 = vst [vmem:[#allocation2 + $0x51] sm:$0xff] %v888_v58  ;;  %1069 = vmatmul.f32.gmra.mxu3 %v919_v9  ;;  %1137 = vmatmul.f32.gmra.mxu0 %v888_v58  ;;  %v2028_v9 = vld [vmem:[%s2094_s4] ss:$0 sm:$0xff] }
 0x144   : > { %1196 = vmatmul.f32.gmra.mxu1 %v950_v1 }
 0x146   : > { %v863_v6 = vpop.f32.mrf.mxu2 }
 0x147   : > { %v864_v47 = vadd.f32 %v863_v6, %v799_v42 }
 0x149   : > { %v889_v7 = vmax.f32 %v864_v47, 0.0 }
 0x14a   : > { %v920_v12 = vld [vmem:[#allocation2 + $0x50] sm:$0xff] }
 0x14b   : > { %v951_v21 = vld [vmem:[#allocation2 + $0x4a] sm:$0xff]  ;;  %905 = vst [vmem:[#allocation2 + $0x59] sm:$0xff] %v889_v7  ;;  %1355 = vmatmul.msk.f32.gmra.mxu3 %vm1632_vm1, %v920_v12  ;;  %1140 = vmatmul.f32.gmra.mxu0 %v889_v7 }
 0x14c   : > { %1362 = vmatmul.msk.f32.gmra.mxu1 %vm1820_vm12, %v951_v21 }
 0x14e   : > { %v866_v24 = vpop.f32.mrf.mxu2 }
 0x14f   : > { %v867_v28 = vadd.f32 %v866_v24, %v802_v32 }
 0x151   : > { %v890_v11 = vmax.f32 %v867_v28, 0.0 }
 0x152   : > { %v921_v55 = vld [vmem:[#allocation2 + $0x58] sm:$0xff] }
 0x153   : > { %v952_v25 = vld [vmem:[#allocation2 + $0x52] sm:$0xff]  ;;  %906 = vst [vmem:[#allocation2 + $0x61] sm:$0xff] %v890_v11  ;;  %1075 = vmatmul.f32.gmra.mxu3 %v921_v55  ;;  %1143 = vmatmul.f32.gmra.mxu0 %v890_v11 }
 0x154   : > { %1202 = vmatmul.f32.gmra.mxu1 %v952_v25 }
 0x156   : > { %v869_v30 = vpop.f32.mrf.mxu2 }
 0x157   : > { %v870_v33 = vadd.f32 %v869_v30, %v805_v57 }
 0x159   : > { %v891_v38 = vmax.f32 %v870_v33, 0.0 }
 0x15a   : > { %v922_v41 = vld [vmem:[#allocation2 + $0x60] sm:$0xff] }
 0x15b   : > { %v953_v48 = vld [vmem:[#allocation2 + $0x5a] sm:$0xff]  ;;  %907 = vst [vmem:[#allocation2 + $0x69] sm:$0xff] %v891_v38  ;;  %1356 = vmatmul.msk.f32.gmra.mxu3 %vm1678_vm2, %v922_v41  ;;  %1146 = vmatmul.f32.gmra.mxu0 %v891_v38 }
 0x15c   : > { %1363 = vmatmul.msk.f32.gmra.mxu1 %vm1867_vm13, %v953_v48 }
 0x15e   : > { %v872_v59 = vpop.f32.mrf.mxu2 }
 0x15f   : > { %v873_v39 = vadd.f32 %v872_v59, %v808_v8 }
 0x161   : > { %v892_v5 = vmax.f32 %v873_v39, 0.0 }
 0x162   : > { %v923_v35 = vld [vmem:[#allocation2 + $0x68] sm:$0xff] }
 0x163   : > { %v954_v53 = vld [vmem:[#allocation2 + $0x62] sm:$0xff]  ;;  %908 = vst [vmem:[#allocation2 + $0x71] sm:$0xff] %v892_v5  ;;  %1081 = vmatmul.f32.gmra.mxu3 %v923_v35  ;;  %1149 = vmatmul.f32.gmra.mxu0 %v892_v5 }
 0x164   : > { %1208 = vmatmul.f32.gmra.mxu1 %v954_v53 }
 0x166   : > { %v875_v51 = vpop.f32.mrf.mxu2 }
 0x167   : > { %v876_v54 = vadd.f32 %v875_v51, %v811_v10 }
 0x169   : > { %v893_v56 = vmax.f32 %v876_v54, 0.0 }
 0x16a   : > { %v924_v19 = vld [vmem:[#allocation2 + $0x70] sm:$0xff] }
 0x16b   : > { %v955_v63 = vld [vmem:[#allocation2 + $0x6a] sm:$0xff]  ;;  %909 = vst [vmem:[#allocation2 + $0x79] sm:$0xff] %v893_v56  ;;  %1357 = vmatmul.msk.f32.gmra.mxu3 %vm1704_vm4, %v924_v19  ;;  %1152 = vmatmul.f32.gmra.mxu0 %v893_v56 }
 0x16c   : > { %1364 = vmatmul.msk.f32.gmra.mxu1 %vm1920_vm14, %v955_v63 }
 0x170   : > { %v1108_v44 = vpop.f32.mrf.mxu0 }
 0x172   : > { %v925_v46 = vld [vmem:[#allocation2 + $0x78] sm:$0xff] }
 0x173   : > { %v956_v16 = vld [vmem:[#allocation2 + $0x72] sm:$0xff]  ;;  %1087 = vmatmul.f32.gmra.mxu3 %v925_v46  ;;  %v957_v58 = vld [vmem:[#allocation2 + $0x7a] sm:$0xff] }
 0x174   : > { %1214 = vmatmul.f32.gmra.mxu1 %v956_v16 }
 0x178   : > { %v1111_v0 = vpop.f32.mrf.mxu0 }
 0x17c   : > { %1365 = vmatmul.msk.f32.gmra.mxu1 %vm1955_vm15, %v957_v58 }
 0x17e   : > { %v1043_v27 = vpop.f32.mrf.mxu3 }
 0x17f   : > { %v1044_v62 = vadd.f32 %v2028_v9, %v1043_v27 }
 0x180   : > { %v1114_v1 = vpop.f32.mrf.mxu0 }
 0x181   : > { %v1109_v2 = vadd.f32 %v1108_v44, %v1044_v62  ;;  %v1173_v42 = vpop.f32.mrf.mxu1 }
 0x183   : > { %v1174_v6 = vadd.f32 %v1173_v42, %v1109_v2 }
 0x185   : > { %v1221_v47 = vadd.f32 %v1174_v6, %v1660_v3 }
 0x186   : > { %v1046_v17 = vpop.f32.mrf.mxu3 }
 0x187   : > { %v1237_v26 = vmax.f32 %v1221_v47, 0.0  ;;  %v1047_v7 = vadd.f32 %v2028_v9, %v1046_v17 }
 0x188   : > { %v1117_v12 = vpop.f32.mrf.mxu0 }
 0x189   : > { %1253 = vst [vmem:[%s2039_s27] sm:$0xff] %v1237_v26  ;;  %v1112_v21 = vadd.f32 %v1111_v0, %v1047_v7  ;;  %v1176_v32 = vpop.f32.mrf.mxu1 }
 0x18b   : > { %v1177_v61 = vadd.f32 %v1176_v32, %v1112_v21 }
 0x18d   : > { %v1222_v3 = vadd.f32 %v1177_v61, %v1663_v4 }
 0x18e   : > { %v1049_v24 = vpop.f32.mrf.mxu3 }
 0x18f   : > { %v1238_v28 = vmax.f32 %v1222_v3, 0.0  ;;  %v1050_v29 = vadd.f32 %v2028_v9, %v1049_v24 }
 0x190   : > { %v1120_v11 = vpop.f32.mrf.mxu0 }
 0x191   : > { %1254 = vst [vmem:[%s2039_s27 + $0x8] sm:$0xff] %v1238_v28  ;;  %v1115_v55 = vadd.f32 %v1114_v1, %v1050_v29  ;;  %v1179_v25 = vpop.f32.mrf.mxu1 }
 0x193   : > { %v1180_v57 = vadd.f32 %v1179_v25, %v1115_v55 }
 0x195   : > { %v1223_v30 = vadd.f32 %v1180_v57, %v1684_v13 }
 0x196   : > { %v1052_v33 = vpop.f32.mrf.mxu3 }
 0x197   : > { %v1239_v37 = vmax.f32 %v1223_v30, 0.0  ;;  %v1053_v49 = vadd.f32 %v2028_v9, %v1052_v33 }
 0x198   : > { %v1123_v38 = vpop.f32.mrf.mxu0 }
 0x199   : > { %1255 = vst [vmem:[%s2039_s27 + $0x10] sm:$0xff] %v1239_v37  ;;  %v1118_v41 = vadd.f32 %v1117_v12, %v1053_v49  ;;  %v1182_v4 = vpop.f32.mrf.mxu1 }
 0x19b   : > { %v1183_v48 = vadd.f32 %v1182_v4, %v1118_v41 }
 0x19d   : > { %v1224_v8 = vadd.f32 %v1183_v48, %v1699_v22 }
 0x19e   : > { %v1055_v59 = vpop.f32.mrf.mxu3 }
 0x19f   : > { %v1240_v39 = vmax.f32 %v1224_v8, 0.0  ;;  %v1056_v40 = vadd.f32 %v2028_v9, %v1055_v59 }
 0x1a0   : > { %v1126_v5 = vpop.f32.mrf.mxu0 }
 0x1a1   : > { %1256 = vst [vmem:[%s2039_s27 + $0x18] sm:$0xff] %v1240_v39  ;;  %v1121_v50 = vadd.f32 %v1120_v11, %v1056_v40  ;;  %v1185_v13 = vpop.f32.mrf.mxu1 }
 0x1a3   : > { %v1186_v35 = vadd.f32 %v1185_v13, %v1121_v50 }
 0x1a5   : > { %v1225_v53 = vadd.f32 %v1186_v35, %v1710_v31 }
 0x1a6   : > { %v1058_v10 = vpop.f32.mrf.mxu3 }
 0x1a7   : > { %v1241_v51 = vmax.f32 %v1225_v53, 0.0  ;;  %v1059_v54 = vadd.f32 %v2028_v9, %v1058_v10 }
 0x1a8   : > { %v1129_v56 = vpop.f32.mrf.mxu0 }
 0x1a9   : > { %1257 = vst [vmem:[%s2039_s27 + $0x20] sm:$0xff] %v1241_v51  ;;  %v1124_v19 = vadd.f32 %v1123_v38, %v1059_v54  ;;  %v1188_v22 = vpop.f32.mrf.mxu1 }
 0x1ab   : > { %v1189_v63 = vadd.f32 %v1188_v22, %v1124_v19 }
 0x1ad   : > { %v1226_v44 = vadd.f32 %v1189_v63, %v1724_v36 }
 0x1ae   : > { %v1061_v46 = vpop.f32.mrf.mxu3 }
 0x1af   : > { %v1242_v16 = vmax.f32 %v1226_v44, 0.0  ;;  %v1062_v0 = vadd.f32 %v2028_v9, %v1061_v46 }
 0x1b0   : > { %v1132_v31 = vpop.f32.mrf.mxu0 }
 0x1b1   : > { %1258 = vst [vmem:[%s2039_s27 + $0x28] sm:$0xff] %v1242_v16  ;;  %v1127_v58 = vadd.f32 %v1126_v5, %v1062_v0  ;;  %v1191_v27 = vpop.f32.mrf.mxu1 }
 0x1b3   : > { %v1192_v62 = vadd.f32 %v1191_v27, %v1127_v58 }
 0x1b5   : > { %v1227_v1 = vadd.f32 %v1192_v62, %v1732_v43 }
 0x1b6   : > { %v1064_v2 = vpop.f32.mrf.mxu3 }
 0x1b7   : > { %v1243_v42 = vmax.f32 %v1227_v1, 0.0  ;;  %v1065_v6 = vadd.f32 %v2028_v9, %v1064_v2 }
 0x1b8   : > { %v1135_v26 = vpop.f32.mrf.mxu0 }
 0x1b9   : > { %1259 = vst [vmem:[%s2039_s27 + $0x30] sm:$0xff] %v1243_v42  ;;  %v1130_v47 = vadd.f32 %v1129_v56, %v1065_v6  ;;  %v1194_v17 = vpop.f32.mrf.mxu1 }
 0x1bb   : > { %v1195_v36 = vadd.f32 %v1194_v17, %v1130_v47 }
 0x1bd   : > { %v1228_v7 = vadd.f32 %v1195_v36, %v1511_v14 }
 0x1be   : > { %v1067_v12 = vpop.f32.mrf.mxu3 }
 0x1bf   : > { %v1244_v21 = vmax.f32 %v1228_v7, 0.0  ;;  %v1068_v32 = vadd.f32 %v2028_v9, %v1067_v12 }
 0x1c0   : > { %v1138_v28 = vpop.f32.mrf.mxu0 }
 0x1c1   : > { %1260 = vst [vmem:[%s2039_s27 + $0x38] sm:$0xff] %v1244_v21  ;;  %v1133_v61 = vadd.f32 %v1132_v31, %v1068_v32  ;;  %v1197_v3 = vpop.f32.mrf.mxu1 }
 0x1c3   : > { %v1198_v43 = vadd.f32 %v1197_v3, %v1133_v61 }
 0x1c5   : > { %v1229_v24 = vadd.f32 %v1198_v43, %v1514_v15 }
 0x1c6   : > { %v1070_v29 = vpop.f32.mrf.mxu3 }
 0x1c7   : > { %v1245_v11 = vmax.f32 %v1229_v24, 0.0  ;;  %v1071_v55 = vadd.f32 %v2028_v9, %v1070_v29 }
 0x1c8   : > { %v1141_v38 = vpop.f32.mrf.mxu0 }
 0x1c9   : > { %1261 = vst [vmem:[%s2039_s27 + $0x40] sm:$0xff] %v1245_v11  ;;  %v1136_v25 = vadd.f32 %v1135_v26, %v1071_v55  ;;  %v1200_v14 = vpop.f32.mrf.mxu1 }
 0x1cb   : > { %v1201_v57 = vadd.f32 %v1200_v14, %v1136_v25 }
 0x1cd   : > { %v1230_v30 = vadd.f32 %v1201_v57, %v1525_v18 }
 0x1ce   : > { %v1073_v33 = vpop.f32.mrf.mxu3 }
 0x1cf   : > { %v1246_v37 = vmax.f32 %v1230_v30, 0.0  ;;  %v1074_v49 = vadd.f32 %v2028_v9, %v1073_v33 }
 0x1d0   : > { %v1144_v18 = vpop.f32.mrf.mxu0 }
 0x1d1   : > { %1262 = vst [vmem:[%s2039_s27 + $0x48] sm:$0xff] %v1246_v37  ;;  %v1139_v41 = vadd.f32 %v1138_v28, %v1074_v49  ;;  %v1203_v15 = vpop.f32.mrf.mxu1 }
 0x1d3   : > { %v1204_v4 = vadd.f32 %v1203_v15, %v1139_v41 }
 0x1d5   : > { %v1231_v48 = vadd.f32 %v1204_v4, %v1529_v20 }
 0x1d6   : > { %v1076_v8 = vpop.f32.mrf.mxu3 }
 0x1d7   : > { %v1247_v59 = vmax.f32 %v1231_v48, 0.0  ;;  %v1077_v39 = vadd.f32 %v2028_v9, %v1076_v8 }
 0x1d8   : > { %v1147_v56 = vpop.f32.mrf.mxu0 }
 0x1d9   : > { %1263 = vst [vmem:[%s2039_s27 + $0x50] sm:$0xff] %v1247_v59  ;;  %v1142_v40 = vadd.f32 %v1141_v38, %v1077_v39  ;;  %v1206_v5 = vpop.f32.mrf.mxu1 }
 0x1db   : > { %v1207_v50 = vadd.f32 %v1206_v5, %v1142_v40 }
 0x1dd   : > { %v1232_v13 = vadd.f32 %v1207_v50, %v1539_v23 }
 0x1de   : > { %v1079_v35 = vpop.f32.mrf.mxu3 }
 0x1df   : > { %v1248_v53 = vmax.f32 %v1232_v13, 0.0  ;;  %v1080_v10 = vadd.f32 %v2028_v9, %v1079_v35 }
 0x1e0   : > { %v1150_v58 = vpop.f32.mrf.mxu0 }
 0x1e1   : > { %1264 = vst [vmem:[%s2039_s27 + $0x58] sm:$0xff] %v1248_v53  ;;  %v1145_v51 = vadd.f32 %v1144_v18, %v1080_v10  ;;  %v1209_v54 = vpop.f32.mrf.mxu1 }
 0x1e3   : > { %v1210_v20 = vadd.f32 %v1209_v54, %v1145_v51 }
 0x1e5   : > { %v1233_v19 = vadd.f32 %v1210_v20, %v1570_v34 }
 0x1e6   : > { %v1082_v22 = vpop.f32.mrf.mxu3 }
 0x1e7   : > { %v1249_v63 = vmax.f32 %v1233_v19, 0.0  ;;  %v1083_v44 = vadd.f32 %v2028_v9, %v1082_v22 }
 0x1e8   : > { %v1153_v36 = vpop.f32.mrf.mxu0 }
 0x1e9   : > { %1265 = vst [vmem:[%s2039_s27 + $0x60] sm:$0xff] %v1249_v63  ;;  %v1148_v46 = vadd.f32 %v1147_v56, %v1083_v44  ;;  %v1212_v16 = vpop.f32.mrf.mxu1 }
 0x1eb   : > { %v1213_v23 = vadd.f32 %v1212_v16, %v1148_v46 }
 0x1ed   : > { %v1234_v0 = vadd.f32 %v1213_v23, %v1599_v45 }
 0x1ee   : > { %v1085_v27 = vpop.f32.mrf.mxu3 }
 0x1ef   : > { %v1250_v31 = vmax.f32 %v1234_v0, 0.0  ;;  %v1086_v62 = vadd.f32 %v2028_v9, %v1085_v27 }
 0x1f1   : > { %1266 = vst [vmem:[%s2039_s27 + $0x68] sm:$0xff] %v1250_v31  ;;  %v1151_v1 = vadd.f32 %v1150_v58, %v1086_v62  ;;  %v1215_v34 = vpop.f32.mrf.mxu1 }
 0x1f3   : > { %v1216_v2 = vadd.f32 %v1215_v34, %v1151_v1 }
 0x1f5   : > { %v1235_v42 = vadd.f32 %v1216_v2, %v1619_v52 }
 0x1f6   : > { %v1088_v6 = vpop.f32.mrf.mxu3 }
 0x1f7   : > { %v1251_v47 = vmax.f32 %v1235_v42, 0.0  ;;  %v1089_v17 = vadd.f32 %v2028_v9, %v1088_v6 }
 0x1f9   : > { %1267 = vst [vmem:[%s2039_s27 + $0x70] sm:$0xff] %v1251_v47  ;;  %v1154_v26 = vadd.f32 %v1153_v36, %v1089_v17  ;;  %v1218_v45 = vpop.f32.mrf.mxu1 }
 0x1fb   : > { %v1219_v7 = vadd.f32 %v1218_v45, %v1154_v26 }
 0x1fd   : > { %v1236_v12 = vadd.f32 %v1219_v7, %v1640_v60 }
 0x1ff   : > { %v1252_v21 = vmax.f32 %v1236_v12, 0.0 }
 0x201   : > { %1268 = vst [vmem:[%s2039_s27 + $0x78] sm:$0xff] %v1252_v21 }
 0x202 PF: > { %s15_s18 = sadd.s32 1, %s1417_s18  }
 0x203   : > { %p12_p4 = scmp.ge.s32.totalorder %s15_s18, 4  }
 0x205   :  { %14 = sbr.rel (!%p12_p4) target bundleno = 1 (0x1), region = 70 }

</bundles_post_ra>
